<compile_context>
chip_gen: v5e
topology: v5e:2x2
jax: 0.10.0
libtpu: 0.0.40
codegen_flags: <defaults>
</compile_context>

<pallas_src>
import math
import functools

import jax
import jax.numpy as jnp
from jax import lax
from jax.experimental import pallas as pl
from jax.experimental.pallas import tpu as pltpu


def _ln_qkv_kernel(x_ref, lnw_ref, lnb_ref, w_ref, b_ref,
                   q_ref, k_ref, v_ref, *, n_head):
    """LayerNorm (f32) + QKV projection (bf16 MXU, f32 acc), head-major out."""
    x = x_ref[0].astype(jnp.float32)              # (TS, C)
    ts, c = x.shape
    inv_c = 1.0 / c

    # LayerNorm statistics in one pass (sum and sum-of-squares together).
    s1 = jnp.sum(x, axis=-1, keepdims=True)
    s2 = jnp.sum(x * x, axis=-1, keepdims=True)
    mean = s1 * inv_c
    var = s2 * inv_c - mean * mean
    xn = (x - mean) * lax.rsqrt(var + 1e-5)
    xn = xn * lnw_ref[0] + lnb_ref[0]             # (TS, C), f32

    # Batched head-major projections: (H,TS,C) x (H,C,hd) -> (H,TS,hd).
    xh = jnp.broadcast_to(xn.astype(jnp.bfloat16)[None], (n_head, ts, c))
    for j, out_ref in enumerate((q_ref, k_ref, v_ref)):
        y = lax.dot_general(
            xh, w_ref[j],                          # w_ref[j]: (H, C, hd) bf16
            dimension_numbers=(((2,), (1,)), ((0,), (0,))),
            preferred_element_type=jnp.float32)
        y = y + b_ref[j]                           # (H, 1, hd) f32 bias
        out_ref[...] = y.astype(out_ref.dtype)


def _flash_attn_proj_kernel(q_ref, k_ref, v_ref, wp_ref, bp_ref, o_ref,
                            m_sc, l_sc, acc_sc, *, scale, tq, tk):
    """Causal flash attention over K/V tiles + fused output projection."""
    qi = pl.program_id(1)
    ki = pl.program_id(2)

    @pl.when(ki == 0)
    def _():
        m_sc[...] = jnp.full_like(m_sc, -jnp.inf)
        l_sc[...] = jnp.zeros_like(l_sc)
        acc_sc[...] = jnp.zeros_like(acc_sc)

    # Skip key blocks that lie entirely above the causal diagonal.
    @pl.when(ki * tk < (qi + 1) * tq)
    def _():
        q = q_ref[...]                             # (H, TQ, hd) bf16
        k = k_ref[...]                             # (H, TK, hd) bf16
        v = v_ref[...]                             # (H, TK, hd) bf16

        # Scores: batched over heads, K transposed inside dot_general (no XLU .T).
        s = jnp.einsum('htd,hsd->hts', q, k,
                       preferred_element_type=jnp.float32) * scale

        q_pos = qi * tq + lax.broadcasted_iota(jnp.int32, (tq, tk), 0)
        k_pos = ki * tk + lax.broadcasted_iota(jnp.int32, (tq, tk), 1)
        causal = jnp.broadcast_to((q_pos >= k_pos)[None], s.shape)
        s = jnp.where(causal, s, jnp.float32(-1e30))

        m_prev = m_sc[...]
        m_new = jnp.maximum(m_prev, jnp.max(s, axis=-1, keepdims=True))
        alpha = jnp.exp(m_prev - m_new)
        p = jnp.exp(s - m_new)
        l_sc[...] = alpha * l_sc[...] + jnp.sum(p, axis=-1, keepdims=True)
        acc_sc[...] = alpha * acc_sc[...] + jnp.einsum(
            'hts,hsd->htd', p.astype(v.dtype), v,
            preferred_element_type=jnp.float32)
        m_sc[...] = m_new

    @pl.when(ki == pl.num_programs(2) - 1)
    def _():
        inv_l = pl.reciprocal(l_sc[...], approx=True)
        y = (acc_sc[...] * inv_l).astype(jnp.bfloat16)        # (H, TQ, hd)
        # Output projection: one batched dot over heads (leading-dim indexed
        # W_proj, no lane slicing), then a head-sum in f32.
        yp = lax.dot_general(
            y, wp_ref[...],                                    # (H, hd, C) bf16
            dimension_numbers=(((2,), (1,)), ((0,), (0,))),
            preferred_element_type=jnp.float32)                # (H, TQ, C)
        o_ref[0] = (jnp.sum(yp, axis=0) + bp_ref[...]).astype(o_ref.dtype)


def gpt2_self_attention(x, params, n_head):
    """x: (B, T, C) float32. params: dict of f32 weights. Returns (B, T, C)."""
    B, T, C = x.shape
    assert C % n_head == 0
    hd = C // n_head
    scale = 1.0 / math.sqrt(hd)

    # Sequence tiles (flash-style streaming). 128 bounds VMEM at real GPT-2
    # sizes (v5e/v7x scoped limits); whole-T for tiny validation shapes.
    TS = 128 if T % 128 == 0 else T
    TQ = TK = TS
    nT, nQ, nK = T // TS, T // TQ, T // TK

    f32, bf16 = jnp.float32, jnp.bfloat16

    ln_w = params["ln_w"].astype(f32)                                   # (1, C)
    ln_b = params["ln_b"].astype(f32)                                   # (1, C)
    # Head-major weight layouts (one-time, host side): no in-kernel lane slicing.
    w_qkv_h = (params["w_qkv"].reshape(C, 3, n_head, hd)
               .transpose(1, 2, 0, 3).astype(bf16))                     # (3,H,C,hd)
    b_qkv_h = params["b_qkv"].reshape(3, n_head, 1, hd).astype(f32)     # (3,H,1,hd)
    w_proj_h = params["w_proj"].reshape(n_head, hd, C).astype(bf16)     # (H,hd,C)
    b_proj = params["b_proj"].astype(f32)                               # (1, C)

    vmem_limit = 48 * 1024 * 1024

    # ---- Kernel 1: LayerNorm + QKV projection -> head-major bf16 q, k, v ----
    qkv_shape = jax.ShapeDtypeStruct((B * n_head, T, hd), bf16)
    q, k, v = pl.pallas_call(
        functools.partial(_ln_qkv_kernel, n_head=n_head),
        out_shape=(qkv_shape, qkv_shape, qkv_shape),
        grid_spec=pltpu.PrefetchScalarGridSpec(
            num_scalar_prefetch=0,
            grid=(B, nT),
            in_specs=[
                pl.BlockSpec((1, TS, C), lambda b, t: (b, t, 0)),
                pl.BlockSpec((1, C), lambda b, t: (0, 0)),
                pl.BlockSpec((1, C), lambda b, t: (0, 0)),
                pl.BlockSpec((3, n_head, C, hd), lambda b, t: (0, 0, 0, 0)),
                pl.BlockSpec((3, n_head, 1, hd), lambda b, t: (0, 0, 0, 0)),
            ],
            out_specs=[
                pl.BlockSpec((n_head, TS, hd), lambda b, t: (b, t, 0)),
                pl.BlockSpec((n_head, TS, hd), lambda b, t: (b, t, 0)),
                pl.BlockSpec((n_head, TS, hd), lambda b, t: (b, t, 0)),
            ],
        ),
        compiler_params=pltpu.CompilerParams(
            dimension_semantics=("parallel", "parallel"),
            vmem_limit_bytes=vmem_limit),
    )(x, ln_w, ln_b, w_qkv_h, b_qkv_h)

    # ---- Kernel 2: causal flash attention + fused output projection ----
    out = pl.pallas_call(
        functools.partial(_flash_attn_proj_kernel, scale=scale, tq=TQ, tk=TK),
        out_shape=jax.ShapeDtypeStruct((B, T, C), x.dtype),
        grid_spec=pltpu.PrefetchScalarGridSpec(
            num_scalar_prefetch=0,
            grid=(B, nQ, nK),
            in_specs=[
                pl.BlockSpec((n_head, TQ, hd), lambda b, qi, ki: (b, qi, 0)),
                pl.BlockSpec((n_head, TK, hd), lambda b, qi, ki: (b, ki, 0)),
                pl.BlockSpec((n_head, TK, hd), lambda b, qi, ki: (b, ki, 0)),
                pl.BlockSpec((n_head, hd, C), lambda b, qi, ki: (0, 0, 0)),
                pl.BlockSpec((1, C), lambda b, qi, ki: (0, 0)),
            ],
            out_specs=pl.BlockSpec((1, TQ, C), lambda b, qi, ki: (b, qi, 0)),
            scratch_shapes=[
                pltpu.VMEM((n_head, TQ, 1), jnp.float32),   # running max
                pltpu.VMEM((n_head, TQ, 1), jnp.float32),   # running denom
                pltpu.VMEM((n_head, TQ, hd), jnp.float32),  # running numerator
            ],
        ),
        compiler_params=pltpu.CompilerParams(
            dimension_semantics=("parallel", "parallel", "arbitrary"),
            vmem_limit_bytes=vmem_limit),
    )(q, k, v, w_proj_h, b_proj)
    return out


def _reference(x, params, n_head):
    """Plain-JAX f32 reference mirroring the PyTorch forward (eval mode)."""
    B, T, C = x.shape
    hd = C // n_head
    mean = jnp.mean(x, axis=-1, keepdims=True)
    var = jnp.mean((x - mean) ** 2, axis=-1, keepdims=True)
    xn = (x - mean) / jnp.sqrt(var + 1e-5) * params["ln_w"][0] + params["ln_b"][0]
    qkv = xn @ params["w_qkv"] + params["b_qkv"][0]
    q, k, v = jnp.split(qkv, 3, axis=-1)
    def heads(t):  # (B,T,C) -> (B,nh,T,hd)
        return t.reshape(B, T, n_head, hd).transpose(0, 2, 1, 3)
    q, k, v = heads(q), heads(k), heads(v)
    s = jnp.einsum("bhqd,bhkd->bhqk", q, k) / math.sqrt(hd)
    mask = jnp.tril(jnp.ones((T, T), bool))
    s = jnp.where(mask, s, -jnp.inf)
    p = jax.nn.softmax(s, axis=-1)
    y = jnp.einsum("bhqk,bhkd->bhqd", p, v)
    y = y.transpose(0, 2, 1, 3).reshape(B, T, C)
    return y @ params["w_proj"] + params["b_proj"][0]


if __name__ == "__main__":
    # Small GPT-2-like config: n_embd=32, n_head=4, bias=True, dropout=0.0 (eval).
    B, T, C, n_head = 2, 8, 32, 4

    key = jax.random.PRNGKey(0)
    k_x, k_qkv, k_bq, k_proj, k_bp = jax.random.split(key, 5)

    x = jax.random.normal(k_x, (B, T, C), dtype=jnp.float32)
    params = {
        "ln_w": jnp.ones((1, C), jnp.float32),
        "ln_b": jnp.zeros((1, C), jnp.float32),
        "w_qkv": 0.02 * jax.random.normal(k_qkv, (C, 3 * C), jnp.float32),
        "b_qkv": 0.01 * jax.random.normal(k_bq, (1, 3 * C), jnp.float32),
        "w_proj": 0.02 * jax.random.normal(k_proj, (C, C), jnp.float32),
        "b_proj": 0.01 * jax.random.normal(k_bp, (1, C), jnp.float32),
    }

    y = gpt2_self_attention(x, params, n_head)
    y = jax.block_until_ready(y)

    y_ref = _reference(x, params, n_head)
    assert y.shape == (B, T, C)
    # bf16 MXU operands with f32 accumulation -> relaxed tolerance vs f32 reference.
    assert jnp.allclose(y, y_ref, rtol=2e-2, atol=2e-3), "mismatch vs reference"

    print("KERNEL_OK")
</pallas_src>

<mosaic_0001>
module attributes {stable_mosaic.version = 11 : i64} {
  func.func @_ln_qkv_kernel(%arg0: i32, %arg1: i32, %arg2: memref<1x8x32xf32, #tpu.memory_space<vmem>>, %arg3: memref<1x32xf32, #tpu.memory_space<vmem>>, %arg4: memref<1x32xf32, #tpu.memory_space<vmem>>, %arg5: memref<3x4x32x8xbf16, #tpu.memory_space<vmem>>, %arg6: memref<3x4x1x8xf32, #tpu.memory_space<vmem>>, %arg7: memref<4x8x8xbf16, #tpu.memory_space<vmem>>, %arg8: memref<4x8x8xbf16, #tpu.memory_space<vmem>>, %arg9: memref<4x8x8xbf16, #tpu.memory_space<vmem>>) attributes {dimension_semantics = [#tpu.dimension_semantics<parallel>, #tpu.dimension_semantics<parallel>], iteration_bounds = array<i64: 2, 1>, scalar_prefetch = 0 : i64, scratch_operands = 0 : i64, tpu.core_type = #tpu.core_type<tc>, window_params = [{transform_indices = @transform_0, window_bounds = array<i64: 1, 8, 32>}, {pipeline_mode = #tpu.pipeline_mode<synchronous>, transform_indices = @transform_1, window_bounds = array<i64: 1, 32>}, {pipeline_mode = #tpu.pipeline_mode<synchronous>, transform_indices = @transform_2, window_bounds = array<i64: 1, 32>}, {pipeline_mode = #tpu.pipeline_mode<synchronous>, transform_indices = @transform_3, window_bounds = array<i64: 3, 4, 32, 8>}, {pipeline_mode = #tpu.pipeline_mode<synchronous>, transform_indices = @transform_4, window_bounds = array<i64: 3, 4, 1, 8>}, {transform_indices = @transform_5, window_bounds = array<i64: 4, 8, 8>}, {transform_indices = @transform_6, window_bounds = array<i64: 4, 8, 8>}, {transform_indices = @transform_7, window_bounds = array<i64: 4, 8, 8>}]} {
    %c0 = arith.constant 0 : index
    %c0_0 = arith.constant 0 : index
    %c0_1 = arith.constant 0 : index
    %0 = vector.load %arg2[%c0, %c0_0, %c0_1] : memref<1x8x32xf32, #tpu.memory_space<vmem>>, vector<1x8x32xf32>
    %1 = vector.shape_cast %0 : vector<1x8x32xf32> to vector<8x32xf32>
    %cst = arith.constant dense<0.000000e+00> : vector<8xf32>
    %2 = vector.multi_reduction <add>, %1, %cst [1] : vector<8x32xf32> to vector<8xf32>
    %3 = vector.shape_cast %2 : vector<8xf32> to vector<8x1xf32>
    %4 = arith.mulf %1, %1 : vector<8x32xf32>
    %cst_2 = arith.constant dense<0.000000e+00> : vector<8xf32>
    %5 = vector.multi_reduction <add>, %4, %cst_2 [1] : vector<8x32xf32> to vector<8xf32>
    %6 = vector.shape_cast %5 : vector<8xf32> to vector<8x1xf32>
    %cst_3 = arith.constant 3.125000e-02 : f32
    %7 = vector.broadcast %cst_3 : f32 to vector<8x1xf32>
    %8 = arith.mulf %3, %7 : vector<8x1xf32>
    %cst_4 = arith.constant 3.125000e-02 : f32
    %9 = vector.broadcast %cst_4 : f32 to vector<8x1xf32>
    %10 = arith.mulf %6, %9 : vector<8x1xf32>
    %11 = arith.mulf %8, %8 : vector<8x1xf32>
    %12 = arith.subf %10, %11 : vector<8x1xf32>
    %13 = vector.broadcast %8 : vector<8x1xf32> to vector<8x32xf32>
    %14 = arith.subf %1, %13 : vector<8x32xf32>
    %cst_5 = arith.constant 9.99999974E-6 : f32
    %15 = vector.broadcast %cst_5 : f32 to vector<8x1xf32>
    %16 = arith.addf %12, %15 : vector<8x1xf32>
    %17 = math.rsqrt %16 : vector<8x1xf32>
    %18 = vector.broadcast %17 : vector<8x1xf32> to vector<8x32xf32>
    %19 = arith.mulf %14, %18 : vector<8x32xf32>
    %c0_6 = arith.constant 0 : index
    %c0_7 = arith.constant 0 : index
    %20 = vector.load %arg3[%c0_6, %c0_7] : memref<1x32xf32, #tpu.memory_space<vmem>>, vector<1x32xf32>
    %21 = vector.shape_cast %20 : vector<1x32xf32> to vector<32xf32>
    %22 = vector.shape_cast %21 : vector<32xf32> to vector<1x32xf32>
    %23 = vector.broadcast %22 : vector<1x32xf32> to vector<8x32xf32>
    %24 = arith.mulf %19, %23 : vector<8x32xf32>
    %c0_8 = arith.constant 0 : index
    %c0_9 = arith.constant 0 : index
    %25 = vector.load %arg4[%c0_8, %c0_9] : memref<1x32xf32, #tpu.memory_space<vmem>>, vector<1x32xf32>
    %26 = vector.shape_cast %25 : vector<1x32xf32> to vector<32xf32>
    %27 = vector.shape_cast %26 : vector<32xf32> to vector<1x32xf32>
    %28 = vector.broadcast %27 : vector<1x32xf32> to vector<8x32xf32>
    %29 = arith.addf %24, %28 : vector<8x32xf32>
    %30 = arith.truncf %29 : vector<8x32xf32> to vector<8x32xbf16>
    %31 = vector.shape_cast %30 : vector<8x32xbf16> to vector<1x8x32xbf16>
    %32 = vector.shape_cast %31 : vector<1x8x32xbf16> to vector<1x8x32xbf16>
    %33 = vector.broadcast %32 : vector<1x8x32xbf16> to vector<4x8x32xbf16>
    %c0_10 = arith.constant 0 : index
    %c0_11 = arith.constant 0 : index
    %c0_12 = arith.constant 0 : index
    %c0_13 = arith.constant 0 : index
    %34 = vector.load %arg5[%c0_10, %c0_11, %c0_12, %c0_13] : memref<3x4x32x8xbf16, #tpu.memory_space<vmem>>, vector<1x4x32x8xbf16>
    %35 = vector.shape_cast %34 : vector<1x4x32x8xbf16> to vector<4x32x8xbf16>
    %cst_14 = arith.constant dense<0.000000e+00> : vector<4x8x8xf32>
    %36 = tpu.matmul %33, %35, %cst_14 {dimension_numbers = #tpu.dot_dimension_numbers<[2], [1], [1], [2], [0, 0, 0, 1, 1, 2], [0], [0]>} : vector<4x8x32xbf16>, vector<4x32x8xbf16>, vector<4x8x8xf32> -> vector<4x8x8xf32>
    %c0_15 = arith.constant 0 : index
    %c0_16 = arith.constant 0 : index
    %c0_17 = arith.constant 0 : index
    %c0_18 = arith.constant 0 : index
    %37 = vector.load %arg6[%c0_15, %c0_16, %c0_17, %c0_18] : memref<3x4x1x8xf32, #tpu.memory_space<vmem>>, vector<1x4x1x8xf32>
    %38 = vector.shape_cast %37 : vector<1x4x1x8xf32> to vector<4x1x8xf32>
    %39 = vector.broadcast %38 : vector<4x1x8xf32> to vector<4x8x8xf32>
    %40 = arith.addf %36, %39 : vector<4x8x8xf32>
    %41 = arith.truncf %40 : vector<4x8x8xf32> to vector<4x8x8xbf16>
    %c0_19 = arith.constant 0 : index
    %c0_20 = arith.constant 0 : index
    %c0_21 = arith.constant 0 : index
    %42 = vector.load %arg7[%c0_19, %c0_20, %c0_21] : memref<4x8x8xbf16, #tpu.memory_space<vmem>>, vector<4x8x8xbf16>
    tpu.vector_store %arg7[%c0_19, %c0_20, %c0_21], %41 {strides = array<i32>} : memref<4x8x8xbf16, #tpu.memory_space<vmem>>, vector<4x8x8xbf16>,
    %c1 = arith.constant 1 : index
    %c0_22 = arith.constant 0 : index
    %c0_23 = arith.constant 0 : index
    %c0_24 = arith.constant 0 : index
    %43 = vector.load %arg5[%c1, %c0_22, %c0_23, %c0_24] : memref<3x4x32x8xbf16, #tpu.memory_space<vmem>>, vector<1x4x32x8xbf16>
    %44 = vector.shape_cast %43 : vector<1x4x32x8xbf16> to vector<4x32x8xbf16>
    %cst_25 = arith.constant dense<0.000000e+00> : vector<4x8x8xf32>
    %45 = tpu.matmul %33, %44, %cst_25 {dimension_numbers = #tpu.dot_dimension_numbers<[2], [1], [1], [2], [0, 0, 0, 1, 1, 2], [0], [0]>} : vector<4x8x32xbf16>, vector<4x32x8xbf16>, vector<4x8x8xf32> -> vector<4x8x8xf32>
    %c1_26 = arith.constant 1 : index
    %c0_27 = arith.constant 0 : index
    %c0_28 = arith.constant 0 : index
    %c0_29 = arith.constant 0 : index
    %46 = vector.load %arg6[%c1_26, %c0_27, %c0_28, %c0_29] : memref<3x4x1x8xf32, #tpu.memory_space<vmem>>, vector<1x4x1x8xf32>
    %47 = vector.shape_cast %46 : vector<1x4x1x8xf32> to vector<4x1x8xf32>
    %48 = vector.broadcast %47 : vector<4x1x8xf32> to vector<4x8x8xf32>
    %49 = arith.addf %45, %48 : vector<4x8x8xf32>
    %50 = arith.truncf %49 : vector<4x8x8xf32> to vector<4x8x8xbf16>
    %c0_30 = arith.constant 0 : index
    %c0_31 = arith.constant 0 : index
    %c0_32 = arith.constant 0 : index
    %51 = vector.load %arg8[%c0_30, %c0_31, %c0_32] : memref<4x8x8xbf16, #tpu.memory_space<vmem>>, vector<4x8x8xbf16>
    tpu.vector_store %arg8[%c0_30, %c0_31, %c0_32], %50 {strides = array<i32>} : memref<4x8x8xbf16, #tpu.memory_space<vmem>>, vector<4x8x8xbf16>,
    %c2 = arith.constant 2 : index
    %c0_33 = arith.constant 0 : index
    %c0_34 = arith.constant 0 : index
    %c0_35 = arith.constant 0 : index
    %52 = vector.load %arg5[%c2, %c0_33, %c0_34, %c0_35] : memref<3x4x32x8xbf16, #tpu.memory_space<vmem>>, vector<1x4x32x8xbf16>
    %53 = vector.shape_cast %52 : vector<1x4x32x8xbf16> to vector<4x32x8xbf16>
    %cst_36 = arith.constant dense<0.000000e+00> : vector<4x8x8xf32>
    %54 = tpu.matmul %33, %53, %cst_36 {dimension_numbers = #tpu.dot_dimension_numbers<[2], [1], [1], [2], [0, 0, 0, 1, 1, 2], [0], [0]>} : vector<4x8x32xbf16>, vector<4x32x8xbf16>, vector<4x8x8xf32> -> vector<4x8x8xf32>
    %c2_37 = arith.constant 2 : index
    %c0_38 = arith.constant 0 : index
    %c0_39 = arith.constant 0 : index
    %c0_40 = arith.constant 0 : index
    %55 = vector.load %arg6[%c2_37, %c0_38, %c0_39, %c0_40] : memref<3x4x1x8xf32, #tpu.memory_space<vmem>>, vector<1x4x1x8xf32>
    %56 = vector.shape_cast %55 : vector<1x4x1x8xf32> to vector<4x1x8xf32>
    %57 = vector.broadcast %56 : vector<4x1x8xf32> to vector<4x8x8xf32>
    %58 = arith.addf %54, %57 : vector<4x8x8xf32>
    %59 = arith.truncf %58 : vector<4x8x8xf32> to vector<4x8x8xbf16>
    %c0_41 = arith.constant 0 : index
    %c0_42 = arith.constant 0 : index
    %c0_43 = arith.constant 0 : index
    %60 = vector.load %arg9[%c0_41, %c0_42, %c0_43] : memref<4x8x8xbf16, #tpu.memory_space<vmem>>, vector<4x8x8xbf16>
    tpu.vector_store %arg9[%c0_41, %c0_42, %c0_43], %59 {strides = array<i32>} : memref<4x8x8xbf16, #tpu.memory_space<vmem>>, vector<4x8x8xbf16>,
    return
  }
  func.func @transform_0(%arg0: i32, %arg1: i32) -> (i32, i32, i32) {
    %c0_i32 = arith.constant 0 : i32
    %c0_i32_0 = arith.constant 0 : i32
    return %arg0, %arg1, %c0_i32 : i32, i32, i32
  }
  func.func @transform_1(%arg0: i32, %arg1: i32) -> (i32, i32) {
    %c0_i32 = arith.constant 0 : i32
    %c0_i32_0 = arith.constant 0 : i32
    %c0_i32_1 = arith.constant 0 : i32
    return %c0_i32, %c0_i32_0 : i32, i32
  }
  func.func @transform_2(%arg0: i32, %arg1: i32) -> (i32, i32) {
    %c0_i32 = arith.constant 0 : i32
    %c0_i32_0 = arith.constant 0 : i32
    %c0_i32_1 = arith.constant 0 : i32
    return %c0_i32, %c0_i32_0 : i32, i32
  }
  func.func @transform_3(%arg0: i32, %arg1: i32) -> (i32, i32, i32, i32) {
    %c0_i32 = arith.constant 0 : i32
    %c0_i32_0 = arith.constant 0 : i32
    %c0_i32_1 = arith.constant 0 : i32
    %c0_i32_2 = arith.constant 0 : i32
    %c0_i32_3 = arith.constant 0 : i32
    return %c0_i32, %c0_i32_0, %c0_i32_1, %c0_i32_2 : i32, i32, i32, i32
  }
  func.func @transform_4(%arg0: i32, %arg1: i32) -> (i32, i32, i32, i32) {
    %c0_i32 = arith.constant 0 : i32
    %c0_i32_0 = arith.constant 0 : i32
    %c0_i32_1 = arith.constant 0 : i32
    %c0_i32_2 = arith.constant 0 : i32
    %c0_i32_3 = arith.constant 0 : i32
    return %c0_i32, %c0_i32_0, %c0_i32_1, %c0_i32_2 : i32, i32, i32, i32
  }
  func.func @transform_5(%arg0: i32, %arg1: i32) -> (i32, i32, i32) {
    %c0_i32 = arith.constant 0 : i32
    %c0_i32_0 = arith.constant 0 : i32
    return %arg0, %arg1, %c0_i32 : i32, i32, i32
  }
  func.func @transform_6(%arg0: i32, %arg1: i32) -> (i32, i32, i32) {
    %c0_i32 = arith.constant 0 : i32
    %c0_i32_0 = arith.constant 0 : i32
    return %arg0, %arg1, %c0_i32 : i32, i32, i32
  }
  func.func @transform_7(%arg0: i32, %arg1: i32) -> (i32, i32, i32) {
    %c0_i32 = arith.constant 0 : i32
    %c0_i32_0 = arith.constant 0 : i32
    return %arg0, %arg1, %c0_i32 : i32, i32, i32
  }
}

</mosaic_0001>

<bundles_post_ra>
// kernel: tpu_custom_call.1
= control target key start
LH: loop header
LB: loop body
LE: loop exit
PB: predicated region body
PF: predicated region fallthrough
CT: control target
= control target key end

     0   :  { %s1759_s0 = inlined_call_operand.vmem [shape: f32[2,8,32], index: 0, kind: input, shape index: {}]   ;;  %s1760_s1 = inlined_call_operand.vmem [shape: f32[1,32], index: 1, kind: input, shape index: {}]   ;;  %s1761_s2 = inlined_call_operand.vmem [shape: f32[1,32], index: 2, kind: input, shape index: {}]   ;;  %s1762_s3 = inlined_call_operand.vmem [shape: bf16[3,4,32,8], index: 3, kind: input, shape index: {}]   ;;  %s1763_s4 = inlined_call_operand.vmem [shape: f32[3,4,1,8], index: 4, kind: input, shape index: {}]   ;;  %s1764_s5 = inlined_call_operand.hbm [shape: bf16[8,8,8], index: 5, kind: output, shape index: {0}]   ;;  %s1765_s6 = inlined_call_operand.hbm [shape: bf16[8,8,8], index: 6, kind: output, shape index: {1}]   ;;  %s1766_s7 = inlined_call_operand.hbm [shape: bf16[8,8,8], index: 7, kind: output, shape index: {2}]  }
   0x1   :  { %1773 = sst [smem:[#allocation9_spill]] %s1759_s0 }
   0x2   :  { %1774 = sst [smem:[#allocation10_spill]] %s1760_s1 }
   0x3   :  { %1775 = sst [smem:[#allocation11_spill]] %s1761_s2 }
   0x4   :  { %13 = vsyncpa [#allocation3], 0 }
   0x5   :  { %15 = vsyncpa [#allocation3 + $0x1], 0 }
   0x6   :  { %16 = vsyncpa [#allocation5], 0 }
   0x7   :  { %18 = vsyncpa [#allocation5 + $0x1], 0  ;;  %s1455_s24 = smov 0   ;;  %s1457_s25 = smov 0  }
   0x8   :  { %s1459_s26 = smov 0   ;;  %s1461_s27 = smov 0  }
   0x9   :  { %s1463_s28 = smov 0   ;;  %s1465_s29 = smov 0  }
   0xa LB: > { %s1768_s30 = sadd.s32 4294967295, %s1411_s29   ;;  %s1767_s8 = sadd.s32 4294967294, %s1411_s29   ;;  %s1411_s29 = sphi %s1465_s29, %s24_s29   ;;  %s1407_s28 = sphi %s1463_s28, %s1789_s28   ;;  %s1403_s27 = sphi %s1461_s27, %s1788_s27   ;;  %s1399_s26 = sphi %s1459_s26, %s1787_s26   ;;  %s1395_s25 = sphi %s1457_s25, %s1786_s25   ;;  %s1391_s24 = sphi %s1455_s24, %s1785_s24  }
   0xb   : > { %s36_s9 = sadd.s32 1, %s1407_s28  ;;  %s157_s10 = sadd.s32 1, %s1399_s26 }
   0xc   : > { %p38_p0 = scmp.ge.s32.totalorder %s36_s9, 2  ;;  %p167_p1 = scmp.ne.s32.totalorder %s1399_s26, %s1395_s25 }
   0xd   : > { %p168_p2 = scmp.eq.s32.totalorder %s1768_s30, 1  ;;  %p173_p3 = scmp.ne.s32.totalorder %s1395_s25, %s1391_s24 }
   0xe   : > { %s1791_s9 = smov (%p38_p0, %s36_s9), 0  ;;  %p174_p5 = scmp.eq.s32.totalorder %s1767_s8, 1 }
   0xf   : > { %p1497_p4 = por %p168_p2, %p167_p1  ;;  %s152_s12 = ssub.s32 %s1407_s28, %s1791_s9 }
  0x10   : > { %p999_p6 = scmp.ge.s32.totalorder %s1411_s29, 1  ;;  %p155_p7 = scmp.eq.s32.totalorder %s152_s12, 0 }
  0x11   : > { %p1506_p8 = por %p174_p5, %p173_p3  ;;  %p270_p9 = scmp.lt.s32.totalorder %s1411_s29, 3 }
  0x12   : > { %s1512_s14 = scalar_select %p155_p7, %s1399_s26, %s157_s10  }
  0x13   : > { %p271_p10 = pnand %p999_p6, %p270_p9 }
  0x14   : > { %p314_p11 = scmp.lt.s32.totalorder (!%p271_p10), %s1403_s27, 1  ;;  %s1778_s0 = sld [smem:[#allocation9_spill]] (!%p271_p10) }
  0x15   : > { %274 = sbr.rel (%p271_p10) target bundleno = 373 (0x175), region = 40  ;;  %s1779_s1 = sld [smem:[#allocation10_spill]] (!%p271_p10) }
  0x16   : > { %s1780_s2 = sld [smem:[#allocation11_spill]] (!%p271_p10)  ;;  %s297_s17 = sand.u32 (!%p271_p10), 1, %s1395_s25  }
  0x17   : > { %s1620_s22 = sshll.u32 (!%p271_p10), %s297_s17, 4  ;;  %s1623_s23 = sshll.u32 (!%p271_p10), %s1403_s27, 4 }
  0x18   : > { %s299_s18 = scalar_lea.vmem (!%p271_p10), [#allocation2], %s1620_s22  ;;  %s813_s21 = scalar_lea.hbm (!%p271_p10), %s1764_s5, %s1623_s23 }
  0x19   : > { %s1638_s10 = sshll.u32 (!%p271_p10), %s813_s21, 4  ;;  %s791_s20 = scalar_lea.sflag (!%p271_p10), [#allocation3], %s297_s17  ;;  %s817_s10 = int_to_ptr.hbm [resolvable:$true] %s1638_s10 }
  0x1a   : > { %s315_s15 = scalar_select %p314_p11, %s1403_s27, 1  ;;  %vm326_vm0 = vcmask 261120   ;;  %v1164_v5 = vld [vmem:[%s1762_s3 + $0x8] sm:$0xff]  ;;  %v1166_v6 = vld [vmem:[%s1762_s3 + $0x18] sm:$0xff]  ;;  %v1163_v9 = vld [vmem:[%s1762_s3] sm:$0xff]  ;;  %vm501_vm4 = vcmask 60416  }
  0x1b   : > { %v1168_v7 = vld [vmem:[%s1762_s3 + $0x28] sm:$0xff]  ;;  %v1170_v8 = vld [vmem:[%s1762_s3 + $0x38] sm:$0xff]  ;;  %415 = vmatpush.bf16.msra.mxu0 %v1164_v5  ;;  %440 = vmatpush.bf16.msra.mxu1 %v1166_v6  ;;  %v1165_v10 = vld [vmem:[%s1762_s3 + $0x10] sm:$0xff]  ;;  %s814_s27 = sshll.u32 %s299_s18, 4  ;;  %s1287_s21 = sshra.s32 %s817_s10, 4  ;;  %s815_s27 = int_to_ptr.vmem [resolvable:$true] %s814_s27  ;;  %s1288_s21 = int_to_ptr.hbm [resolvable:$true] %s1287_s21 }
  0x1c   : > { %s1003_s16 = sshll.u32 %s315_s15, 3  ;;  %465 = vmatpush.bf16.msra.mxu2 %v1168_v7  ;;  %490 = vmatpush.bf16.msra.mxu3 %v1170_v8  ;;  %v1167_v11 = vld [vmem:[%s1762_s3 + $0x20] sm:$0xff]  ;;  %v1169_v13 = vld [vmem:[%s1762_s3 + $0x30] sm:$0xff]  ;;  %v1176_v17 = vld [vmem:[%s1762_s3 + $0x68] sm:$0xff]  ;;  %s1289_s8 = scalar_lea.hbm %s1288_s21, 16 }
  0x1d   : > { %s320_s19 = scalar_lea.vmem %s1778_s0, %s1003_s16  ;;  %v1178_v18 = vld [vmem:[%s1762_s3 + $0x78] sm:$0xff]  ;;  %v1172_v19 = vld [vmem:[%s1762_s3 + $0x48] sm:$0xff]  ;;  %v1175_v22 = vld [vmem:[%s1762_s3 + $0x60] sm:$0xff]  ;;  %p1290_p12 = scmp.ne.s32.totalorder %s1288_s21, %s1289_s8 }
  0x1e   : > { %v325_v0 = vld [vmem:[%s320_s19] sm:$0xff]  ;;  %v1174_v21 = vld [vmem:[%s1762_s3 + $0x58] sm:$0xff]  ;;  %v1177_v23 = vld [vmem:[%s1762_s3 + $0x70] sm:$0xff]  ;;  %p1294_p1 = scmp.lt.s32.totalorder %s1288_s21, %s1764_s5 }
  0x1f   : > { %v327_v1 = vsel %vm326_vm0, %v325_v0, 0.0  ;;  %v330_v2 = vmul.f32 %v325_v0, %v325_v0  ;;  %416 = vmatpush.bf16.msra.mxu0 %v1163_v9  ;;  %441 = vmatpush.bf16.msra.mxu1 %v1165_v10  ;;  %v1171_v25 = vld [vmem:[%s1762_s3 + $0x40] sm:$0xff]  ;;  %v1173_v26 = vld [vmem:[%s1762_s3 + $0x50] sm:$0xff]  ;;  %v1184_v41 = vld [vmem:[%s1762_s3 + $0xa8] sm:$0xff]  ;;  %p1291_p13 = pnand %p1290_p12, %p1497_p4 }
  0x20   : > { %328 = vadd.xlane.f32.xlu0 %v327_v1  ;;  %466 = vmatpush.bf16.msra.mxu2 %v1167_v11  ;;  %v1257_v34 = vld [vmem:[%s1779_s1] ss:$0 sm:$0xff]  ;;  %v1186_v42 = vld [vmem:[%s1762_s3 + $0xb8] sm:$0xff]  ;;  %v1180_v43 = vld [vmem:[%s1762_s3 + $0x88] sm:$0xff] }
  0x21   : > { %v331_v3 = vsel %vm326_vm0, %v330_v2, 0.0  ;;  %491 = vmatpush.bf16.msra.mxu3 %v1169_v13  ;;  %v1258_v36 = vld [vmem:[%s1780_s2] ss:$0 sm:$0xff]  ;;  %v1182_v44 = vld [vmem:[%s1762_s3 + $0x98] sm:$0xff]  ;;  %v1185_v46 = vld [vmem:[%s1762_s3 + $0xb0] sm:$0xff]  ;;  %p1292_p0 = pneg %p1291_p13 }
  0x22   : > { %v1183_v45 = vld [vmem:[%s1762_s3 + $0xa0] sm:$0xff]  ;;  %v1181_v48 = vld [vmem:[%s1762_s3 + $0x90] sm:$0xff] }
  0x23   : > { %558 = vmatpush.bf16.msrb.mxu0 %v1172_v19  ;;  %583 = vmatpush.bf16.msrb.mxu1 %v1174_v21  ;;  %v1179_v47 = vld [vmem:[%s1762_s3 + $0x80] sm:$0xff] }
  0x24   : > { %608 = vmatpush.bf16.msrb.mxu2 %v1176_v17  ;;  %v1259_v49 = vld [vmem:[%s1763_s4] ss:$0 sm:$0xff]  ;;  %v1260_v50 = vld [vmem:[%s1763_s4 + $0x1] ss:$0 sm:$0xff]  ;;  %v1261_v57 = vld [vmem:[%s1763_s4 + $0x2] ss:$0 sm:$0xff] }
  0x25   : > { %633 = vmatpush.bf16.msrb.mxu3 %v1178_v18  ;;  %v1262_v58 = vld [vmem:[%s1763_s4 + $0x3] ss:$0 sm:$0xff] }
  0x27   : > { %559 = vmatpush.bf16.msrb.mxu0 %v1171_v25  ;;  %584 = vmatpush.bf16.msrb.mxu1 %v1173_v26 }
  0x28   : > { %332 = vadd.xlane.f32.xlu0 %v331_v3  ;;  %609 = vmatpush.bf16.msrb.mxu2 %v1175_v22  ;;  %v1263_v3 = vld [vmem:[%s1763_s4 + $0x4] ss:$0 sm:$0xff] }
  0x29   : > { %634 = vmatpush.bf16.msrb.mxu3 %v1177_v23 }
  0x93   : > { %v329_v4 = vpop.xlane.xlu0 %328 }
  0x94   : > { %v334_v12 = vmul.f32 0.03125, %v329_v4  ;;  %v1264_v4 = vld [vmem:[%s1763_s4 + $0x5] ss:$0 sm:$0xff] }
  0x96   : > { %v336_v15 = vmul.f32 %v334_v12, %v334_v12  ;;  %v338_v33 = vsub.f32 %v325_v0, %v334_v12 }
  0x9b   : > { %v333_v14 = vpop.xlane.xlu0 %332 }
  0x9c   : > { %v335_v16 = vmul.f32 0.03125, %v333_v14 }
  0x9e   : > { %v337_v20 = vsub.f32 %v335_v16, %v336_v15 }
  0xa0   : > { %v339_v24 = vadd.f32 1e-05, %v337_v20 }
  0xa2   : > { %1271 = vrsqrt.f32 %v339_v24  ;;  %vm346_vm2 = vweird.f32 %v339_v24 }
  0xa8   : > { %v1272_v27 = vpop.eup %1271 }
  0xa9   : > { %v341_v28 = vmul.f32 %v1272_v27, %v339_v24  ;;  %vm347_vm1 = vweird.f32 %v1272_v27 }
  0xaa   : > { %vm348_vm3 = vmor %vm346_vm2, %vm347_vm1 }
  0xab   : > { %v342_v29 = vmul.f32 %v1272_v27, %v341_v28 }
  0xad   : > { %v343_v30 = vmul.f32 0.5, %v342_v29 }
  0xaf   : > { %v344_v31 = vsub.f32 1.5, %v343_v30 }
  0xb1   : > { %v345_v32 = vmul.f32 %v1272_v27, %v344_v31 }
  0xb3   : > { %v349_v35 = vsel %vm348_vm3, %v1272_v27, %v345_v32 }
  0xb4   : > { %v350_v37 = vmul.f32 %v349_v35, %v338_v33 }
  0xb6   : > { %v355_v38 = vmul.f32 %v1257_v34, %v350_v37 }
  0xb8   : > { %v360_v39 = vadd.f32 %v1258_v36, %v355_v38 }
  0xba   : > { %v361_v40 = vpack.c.bf16 %v360_v39, %v360_v39 }
  0xbc   : > { %1012 = vmatmul.msk.bf16.vlgmr.msra.gmra.mxu0 %vm326_vm0, %v361_v40  ;;  %1021 = vmatmul.msk.bf16.vlgmr.msra.gmra.mxu1 %vm326_vm0, %v361_v40 }
  0xbd   : > { %1030 = vmatmul.msk.bf16.vlgmr.msra.gmra.mxu2 %vm326_vm0, %v361_v40  ;;  %1039 = vmatmul.msk.bf16.vlgmr.msra.gmra.mxu3 %vm326_vm0, %v361_v40 }
  0xbe   : > { %750 = vmatpush.bf16.msra.mxu2 %v1184_v41  ;;  %775 = vmatpush.bf16.msra.mxu3 %v1186_v42 }
  0xbf   : > { %700 = vmatpush.bf16.msra.mxu0 %v1180_v43  ;;  %725 = vmatpush.bf16.msra.mxu1 %v1182_v44 }
  0xc2   : > { %751 = vmatpush.bf16.msra.mxu2 %v1183_v45  ;;  %776 = vmatpush.bf16.msra.mxu3 %v1185_v46 }
  0xc3   : > { %701 = vmatpush.bf16.msra.mxu0 %v1179_v47  ;;  %726 = vmatpush.bf16.msra.mxu1 %v1181_v48 }
  0xcc   : > { %1068 = vmatmul.msk.bf16.vlgmr.msrb.gmra.mxu0 %vm326_vm0, %v361_v40  ;;  %1077 = vmatmul.msk.bf16.vlgmr.msrb.gmra.mxu1 %vm326_vm0, %v361_v40 }
  0xcd   : > { %1086 = vmatmul.msk.bf16.vlgmr.msrb.gmra.mxu2 %vm326_vm0, %v361_v40  ;;  %1095 = vmatmul.msk.bf16.vlgmr.msrb.gmra.mxu3 %vm326_vm0, %v361_v40 }
  0xdc   : > { %1124 = vmatmul.msk.bf16.vlgmr.msra.gmra.mxu0 %vm326_vm0, %v361_v40  ;;  %1133 = vmatmul.msk.bf16.vlgmr.msra.gmra.mxu1 %vm326_vm0, %v361_v40 }
  0xdd   : > { %1142 = vmatmul.msk.bf16.vlgmr.msra.gmra.mxu2 %vm326_vm0, %v361_v40  ;;  %1151 = vmatmul.msk.bf16.vlgmr.msra.gmra.mxu3 %vm326_vm0, %v361_v40 }
 0x139   : > { %v418_v51 = vpop.f32.mrf.mxu0  ;;  %v443_v52 = vpop.f32.mrf.mxu1 }
 0x13a   : > { %v419_v53 = vadd.f32 %v1259_v49, %v418_v51  ;;  %v444_v54 = vadd.f32 %v1260_v50, %v443_v52 }
 0x13c   : > { %v497_v55 = vpack.c.bf16 %v419_v53, %v419_v53  ;;  %v498_v56 = vpack.c.bf16 %v444_v54, %v444_v54 }
 0x13e   : > { %502 = vst.msk [vmem:[%s299_s18] sm:$0xf] %vm501_vm4, %v497_v55 }
 0x13f   : > { %503 = vst.msk [vmem:[%s299_s18 + $0x4] sm:$0xf] %vm501_vm4, %v498_v56 }
 0x140   : > { %v468_v59 = vpop.f32.mrf.mxu2  ;;  %v493_v60 = vpop.f32.mrf.mxu3 }
 0x141   : > { %v469_v61 = vadd.f32 %v1261_v57, %v468_v59  ;;  %v494_v62 = vadd.f32 %v1262_v58, %v493_v60  ;;  %v420_v63 = vpop.f32.mrf.mxu0  ;;  %v445_v0 = vpop.f32.mrf.mxu1 }
 0x143   : > { %v499_v1 = vpack.c.bf16 %v469_v61, %v469_v61  ;;  %v500_v2 = vpack.c.bf16 %v494_v62, %v494_v62 }
 0x145   : > { %504 = vst.msk [vmem:[%s299_s18 + $0x8] sm:$0xf] %vm501_vm4, %v499_v1 }
 0x146   : > { %505 = vst.msk [vmem:[%s299_s18 + $0xc] sm:$0xf] %vm501_vm4, %v500_v2  ;;  %s1293_s18 = scalar_lea.hbm %s1764_s5, 32 }
 0x147   : > { %p1295_p2 = scmp.lt.s32.totalorder %s1293_s18, %s1289_s8 }
 0x149   : > { %p1296_p3 = por %p1295_p2, %p1294_p1 }
 0x14b   : > { %p1297_p5 = pnand %p1296_p3, %p1292_p0 }
 0x14d   : > { %1300 = shalt.err (!%p1297_p5)
}
 0x14e   : > { %s1769_s17 = smov 64   ;;  %s1771_s15 = smov 4   ;;  %v470_v5 = vpop.f32.mrf.mxu2  ;;  %v495_v6 = vpop.f32.mrf.mxu3  ;;  %v1265_v13 = vld [vmem:[%s1763_s4 + $0x6] ss:$0 sm:$0xff]  ;;  %v1266_v14 = vld [vmem:[%s1763_s4 + $0x7] ss:$0 sm:$0xff] }
 0x14f   : > { %1190 = dma.vmem_to_hbm [thread:$0]  (%p1497_p4), %s815_s27, 256, %s817_s10, %s791_s20, %s1769_s17, %s1769_s17, %s1771_s15   ;;  %v561_v7 = vpop.f32.mrf.mxu0  ;;  %v586_v8 = vpop.f32.mrf.mxu1 }
 0x150   : > { %v562_v9 = vadd.f32 %v1263_v3, %v561_v7  ;;  %v587_v10 = vadd.f32 %v1264_v4, %v586_v8  ;;  %s306_s16 = scalar_lea.vmem [#allocation4], %s1620_s22  ;;  %s831_s19 = scalar_lea.hbm %s1765_s6, %s1623_s23  ;;  %v1267_v23 = vld [vmem:[%s1763_s4 + $0x8] ss:$0 sm:$0xff]  ;;  %v1268_v24 = vld [vmem:[%s1763_s4 + $0x9] ss:$0 sm:$0xff] }
 0x151   : > { %s832_s20 = sshll.u32 %s306_s16, 4  ;;  %s1781_s21 = sadd.s32 4294967295, %s1411_s29   ;;  %s833_s20 = int_to_ptr.vmem [resolvable:$true] %s832_s20 }
 0x152   : > { %v640_v11 = vpack.c.bf16 %v562_v9, %v562_v9  ;;  %v641_v12 = vpack.c.bf16 %v587_v10, %v587_v10  ;;  %s1679_s18 = sand.u32 1, %s1781_s21   ;;  %s834_s12 = sshll.u32 %s831_s19, 4  ;;  %s835_s12 = int_to_ptr.hbm [resolvable:$true] %s834_s12 }
 0x153   : > { %s796_s27 = scalar_lea.sflag [#allocation5], %s1679_s18  ;;  %s1315_s10 = sshra.s32 %s835_s12, 4  ;;  %s1316_s10 = int_to_ptr.hbm [resolvable:$true] %s1315_s10 }
 0x154   : > { %644 = vst.msk [vmem:[%s306_s16] sm:$0xf] %vm501_vm4, %v640_v11  ;;  %s1317_s19 = scalar_lea.hbm %s1316_s10, 16  ;;  %p1322_p10 = scmp.lt.s32.totalorder %s1316_s10, %s1765_s6 }
 0x155   : > { %645 = vst.msk [vmem:[%s306_s16 + $0x4] sm:$0xf] %vm501_vm4, %v641_v12  ;;  %p1318_p6 = scmp.ne.s32.totalorder %s1316_s10, %s1317_s19 }
 0x156   : > { %v611_v15 = vpop.f32.mrf.mxu2  ;;  %v636_v16 = vpop.f32.mrf.mxu3 }
 0x157   : > { %v612_v17 = vadd.f32 %v1265_v13, %v611_v15  ;;  %v637_v18 = vadd.f32 %v1266_v14, %v636_v16  ;;  %v563_v19 = vpop.f32.mrf.mxu0  ;;  %v588_v20 = vpop.f32.mrf.mxu1  ;;  %p1319_p7 = pnand %p1318_p6, %p1497_p4 }
 0x159   : > { %v642_v21 = vpack.c.bf16 %v612_v17, %v612_v17  ;;  %v643_v22 = vpack.c.bf16 %v637_v18, %v637_v18  ;;  %p1320_p9 = pneg %p1319_p7 }
 0x15b   : > { %646 = vst.msk [vmem:[%s306_s16 + $0x8] sm:$0xf] %vm501_vm4, %v642_v21 }
 0x15c   : > { %647 = vst.msk [vmem:[%s306_s16 + $0xc] sm:$0xf] %vm501_vm4, %v643_v22  ;;  %s1321_s16 = scalar_lea.hbm %s1765_s6, 32 }
 0x15d   : > { %p1323_p11 = scmp.lt.s32.totalorder %s1321_s16, %s1317_s19 }
 0x15f   : > { %p1324_p12 = por %p1323_p11, %p1322_p10 }
 0x161   : > { %p1325_p13 = pnand %p1324_p12, %p1320_p9 }
 0x163   : > { %1328 = shalt.err (!%p1325_p13)
}
 0x164   : > { %s1782_s0 = smov 4   ;;  %s1783_s1 = smov 64   ;;  %v613_v25 = vpop.f32.mrf.mxu2  ;;  %v638_v26 = vpop.f32.mrf.mxu3  ;;  %v1269_v33 = vld [vmem:[%s1763_s4 + $0xa] ss:$0 sm:$0xff]  ;;  %v1270_v34 = vld [vmem:[%s1763_s4 + $0xb] ss:$0 sm:$0xff] }
 0x165   : > { %1191 = dma.vmem_to_hbm [thread:$0]  (%p1497_p4), %s833_s20, 256, %s835_s12, %s796_s27, %s1783_s1, %s1783_s1, %s1782_s0   ;;  %v703_v27 = vpop.f32.mrf.mxu0  ;;  %v728_v28 = vpop.f32.mrf.mxu1 }
 0x166   : > { %v704_v29 = vadd.f32 %v1267_v23, %v703_v27  ;;  %v729_v30 = vadd.f32 %v1268_v24, %v728_v28  ;;  %s313_s8 = scalar_lea.vmem [#allocation6], %s1620_s22  ;;  %s849_s10 = scalar_lea.hbm %s1766_s7, %s1623_s23 }
 0x167   : > { %s850_s19 = sshll.u32 %s313_s8, 4  ;;  %s852_s21 = sshll.u32 %s849_s10, 4  ;;  %s851_s19 = int_to_ptr.vmem [resolvable:$true] %s850_s19  ;;  %s853_s21 = int_to_ptr.hbm [resolvable:$true] %s852_s21 }
 0x168   : > { %v782_v31 = vpack.c.bf16 %v704_v29, %v704_v29  ;;  %v783_v32 = vpack.c.bf16 %v729_v30, %v729_v30  ;;  %s1343_s22 = sshra.s32 %s853_s21, 4  ;;  %s1349_s17 = scalar_lea.hbm %s1766_s7, 32  ;;  %s1344_s22 = int_to_ptr.hbm [resolvable:$true] %s1343_s22 }
 0x169   : > { %s1345_s23 = scalar_lea.hbm %s1344_s22, 16  ;;  %p1350_p3 = scmp.lt.s32.totalorder %s1344_s22, %s1766_s7 }
 0x16a   : > { %786 = vst.msk [vmem:[%s313_s8] sm:$0xf] %vm501_vm4, %v782_v31  ;;  %p1346_p0 = scmp.ne.s32.totalorder %s1344_s22, %s1345_s23  ;;  %p1351_p5 = scmp.lt.s32.totalorder %s1349_s17, %s1345_s23 }
 0x16b   : > { %787 = vst.msk [vmem:[%s313_s8 + $0x4] sm:$0xf] %vm501_vm4, %v783_v32 }
 0x16c   : > { %v753_v35 = vpop.f32.mrf.mxu2  ;;  %v778_v36 = vpop.f32.mrf.mxu3  ;;  %p1347_p1 = pnand %p1346_p0, %p1497_p4  ;;  %p1352_p6 = por %p1351_p5, %p1350_p3 }
 0x16d   : > { %v754_v37 = vadd.f32 %v1269_v33, %v753_v35  ;;  %v779_v38 = vadd.f32 %v1270_v34, %v778_v36  ;;  %v705_v39 = vpop.f32.mrf.mxu0  ;;  %v730_v40 = vpop.f32.mrf.mxu1 }
 0x16e   : > { %p1348_p2 = pneg %p1347_p1 }
 0x16f   : > { %v784_v41 = vpack.c.bf16 %v754_v37, %v754_v37  ;;  %v785_v42 = vpack.c.bf16 %v779_v38, %v779_v38 }
 0x170   : > { %p1353_p7 = pnand %p1352_p6, %p1348_p2 }
 0x171   : > { %788 = vst.msk [vmem:[%s313_s8 + $0x8] sm:$0xf] %vm501_vm4, %v784_v41 }
 0x172   : > { %789 = vst.msk [vmem:[%s313_s8 + $0xc] sm:$0xf] %vm501_vm4, %v785_v42 }
 0x173   : > { %1356 = shalt.err (!%p1353_p7)
}
 0x174   : > { %1192 = dma.vmem_to_hbm [thread:$0]  (%p1497_p4), %s851_s19, 256, %s853_s21, %s796_s27, %s1783_s1, %s1783_s1, %s1782_s0   ;;  %v755_v43 = vpop.f32.mrf.mxu2  ;;  %v780_v44 = vpop.f32.mrf.mxu3 }
 0x175 PF: > { %p1206_p9 = scmp.ge.s32.totalorder %s1411_s29, 2  ;;  %s867_s8 = sand.u32 1, %s1391_s24  }
 0x176   : > { %s868_s20 = scalar_lea.sflag [#allocation3], %s867_s8 }
 0x177   : > { %p1197_p10 = pnand %p1206_p9, %p1506_p8 }
 0x179   : > { %p1198_p11 = pneg %p1197_p10 }
 0x17b   : > { %1382 = dma.done.wait (%p1198_p11), %s868_s20, 256  }
 0x17c   : > { %1384 = vsyncadd (%p1198_p11), %s868_s20, 4294967040  ;;  %s1784_s11 = sadd.s32 4294967294, %s1411_s29  }
 0x17d   : > { %s877_s12 = sand.u32 1, %s1784_s11  }
 0x17e   : > { %s878_s10 = scalar_lea.sflag [#allocation5], %s877_s12 }
 0x17f   : > { %1386 = dma.done.wait (%p1198_p11), %s878_s10, 512  }
 0x180   : > { %1388 = vsyncadd (%p1198_p11), %s878_s10, 4294966784  ;;  %s24_s29 = sadd.s32 1, %s1411_s29   ;;  %s1785_s24 = smov %s1395_s25 }
 0x181   : > { %p21_p4 = scmp.ge.s32.totalorder %s24_s29, 4   ;;  %s1786_s25 = smov %s1399_s26 }
 0x182   : > { %s1787_s26 = smov %s1512_s14  ;;  %s1788_s27 = smov %s1407_s28 }
 0x183   : > { %s1789_s28 = smov %s1791_s9  ;;  %23 = sbr.rel (!%p21_p4) target bundleno = 10 (0xa), region = 111 }
 0x188   :  { %894 = vsyncpa [#allocation3], 1 }
 0x189   :  { %896 = vsyncpa [#allocation3 + $0x1], 1 }
 0x18a   :  { %897 = vsyncpa [#allocation5], 1 }
 0x18b   :  { %899 = vsyncpa [#allocation5 + $0x1], 1 }

</bundles_post_ra>
